<compile_context>
chip_gen: v7x
topology: tpu7x:2x2x1
jax: 0.10.0
libtpu: 0.0.40
codegen_flags: <defaults>
</compile_context>

<pallas_src>
import functools

import jax
import jax.numpy as jnp
from jax import lax
from jax.experimental import pallas as pl
from jax.experimental.pallas import tpu as pltpu

# ----------------------------- configuration ------------------------------
B = 8                 # batch size
NUM_CLASSES = 16
FEAT_DIM = 32
OUT_LANES = 128       # lane-dense packed scalar output

EPS_SMOOTH = 0.1      # label smoothing epsilon (CE + focal)
FOCAL_GAMMA = 2.0
TRI_MARGIN = 0.3      # TripletLoss margin
RL_MARGIN = 1.3       # RankedLoss defaults
RL_ALPHA = 2.0
RL_TVAL = 1.0

W_CE = 1.0            # params.crossentropy.weight
W_TRI = 1.0           # params.triplet.weight
W_CEN = 0.0005        # params.center.weight
W_FOC = 0.25          # params.focal.weight
W_RANK = 0.4          # params.ranked.weight

INV_B = 1.0 / float(B)


# ------------------------------ kernel helpers -----------------------------
def _dot_t(a, b):
    # a @ b.T without an explicit transpose (contract last dims of both).
    return lax.dot_general(
        a, b, (((1,), (1,)), ((), ())), preferred_element_type=jnp.float32
    )


def _row_sumsq(x):
    # (1, N) row vector of per-row squared L2 norms of x:(N, D), via MXU,
    # avoiding a (N,1)->(1,N) transpose.  Only used for the (non-symmetric)
    # center-loss term; the symmetric grams recover norms from their diagonal.
    ones = jnp.ones((1, x.shape[1]), jnp.float32)
    return lax.dot_general(
        ones, x * x, (((1,), (1,)), ((), ())), preferred_element_type=jnp.float32
    )


def _sum_all(x):
    # full reduction kept 2-D: (M, N) -> (1, 1)
    return jnp.sum(jnp.sum(x, axis=1, keepdims=True), axis=0, keepdims=True)


# -------------------------------- the kernel -------------------------------
def reid_loss_kernel(score_ref, slab_ref, tcol_ref, trow_ref, out_ref):
    score = score_ref[...].astype(jnp.float32)      # (B, C)
    slab = slab_ref[...].astype(jnp.float32)        # (3B + C, D)
    t_col = tcol_ref[...]                           # (B, 1) int32
    t_row = trow_ref[...]                           # (1, B) int32

    ft = slab[0 * B:1 * B, :]                       # (B, D) triplet features
    fc = slab[1 * B:2 * B, :]                       # (B, D) center features
    fr = slab[2 * B:3 * B, :]                       # (B, D) ranked features
    centers = slab[3 * B:, :]                       # (C, D) CenterLoss params

    b, c = score.shape

    # ---------- label masks (pure VPU compares, no MXU) ----------
    class_iota = lax.broadcasted_iota(jnp.int32, (b, c), 1)
    onehot = (class_iota == t_col).astype(jnp.float32)         # (B, C)
    same = (t_col == t_row).astype(jnp.float32)                # (B, B)
    row_i = lax.broadcasted_iota(jnp.int32, (b, b), 0)
    col_i = lax.broadcasted_iota(jnp.int32, (b, b), 1)
    eye = (row_i == col_i).astype(jnp.float32)                 # (B, B)

    # ---------- shared log-softmax (CE + Focal) ----------
    m = jnp.max(score, axis=1, keepdims=True)
    z = score - m
    lse = jnp.log(jnp.sum(jnp.exp(z), axis=1, keepdims=True))
    log_probs = z - lse                              # (B, C)
    probs = jnp.exp(log_probs)

    smooth = (1.0 - EPS_SMOOTH) * onehot + EPS_SMOOTH / float(c)

    # CrossEntropy with label smoothing:  (-t * logp).mean(0).sum()
    ce = _sum_all(-smooth * log_probs) * INV_B       # (1, 1)

    # Focal loss (label-smoothed, gamma = 2)
    one_minus_p = 1.0 - probs
    focal_mod = one_minus_p * one_minus_p
    foc = _sum_all(-smooth * focal_mod * log_probs) * INV_B

    # ---------- Triplet loss (batch-hard mining, margin ranking) ----------
    gram = _dot_t(ft, ft)                                     # (B, B) MXU
    diag = gram * eye                                         # diag holds ||ft_i||^2
    sq_col = jnp.sum(diag, axis=1, keepdims=True)             # (B, 1)
    sq_row = jnp.sum(diag, axis=0, keepdims=True)             # (1, B)
    d2 = sq_col + sq_row - 2.0 * gram
    dist = jnp.sqrt(jnp.maximum(d2, 1e-12))                   # (B, B)

    dist_ap = jnp.max(jnp.where(same > 0.5, dist, -1e30), axis=1, keepdims=True)
    dist_an = jnp.min(jnp.where(same < 0.5, dist, 1e30), axis=1, keepdims=True)
    tri_per = jnp.maximum(dist_ap - dist_an + TRI_MARGIN, 0.0)
    tri = jnp.sum(tri_per, axis=0, keepdims=True) * INV_B     # (1, 1)

    # ---------- Center loss ----------
    xs = jnp.sum(fc * fc, axis=1, keepdims=True)              # (B, 1)
    cs = _row_sumsq(centers)                                  # (1, C)
    distmat = xs + cs - 2.0 * _dot_t(fc, centers)             # (B, C)
    masked = distmat * onehot
    cen = _sum_all(jnp.clip(masked, 1e-12, 1e12)) * INV_B

    # ---------- Ranked list loss ----------
    norm = jnp.sqrt(jnp.sum(fr * fr, axis=1, keepdims=True)) + 1e-12
    frn = fr * pl.reciprocal(norm, approx=True)
    rgram = _dot_t(frn, frn)                                  # (B, B) MXU
    rdiag = rgram * eye
    rsq_col = jnp.sum(rdiag, axis=1, keepdims=True)
    rsq_row = jnp.sum(rdiag, axis=0, keepdims=True)
    rd2 = rsq_col + rsq_row - 2.0 * rgram
    rdist = jnp.sqrt(jnp.maximum(rd2, 1e-12))                 # (B, B)

    is_pos = same * (1.0 - eye)
    is_neg = 1.0 - same

    ap = jnp.maximum(rdist + RL_MARGIN - RL_ALPHA, 0.0) * is_pos
    ap_cnt = jnp.sum(jnp.where(ap > 0.0, 1.0, 0.0), axis=1, keepdims=True) + 1e-5
    loss_ap = jnp.sum(ap, axis=1, keepdims=True) * pl.reciprocal(ap_cnt, approx=True)

    neg_mask = is_neg * jnp.where(rdist < RL_ALPHA, 1.0, 0.0)
    an_w = jnp.exp(RL_TVAL * (RL_ALPHA - rdist)) * neg_mask
    an_wsum = jnp.sum(an_w, axis=1, keepdims=True) + 1e-5
    an_sum = jnp.sum((RL_ALPHA - rdist) * an_w, axis=1, keepdims=True)
    loss_an = an_sum * pl.reciprocal(an_wsum, approx=True)

    rank = jnp.sum(loss_ap + loss_an, axis=0, keepdims=True) * INV_B   # (1, 1)

    # ---------- weighted items + total, packed into one lane-dense row ------
    ce_w = W_CE * ce
    tri_w = W_TRI * tri
    cen_w = W_CEN * cen
    foc_w = W_FOC * foc
    rank_w = W_RANK * rank
    total = ce_w + tri_w + cen_w + foc_w + rank_w

    lane = lax.broadcasted_iota(jnp.int32, (1, OUT_LANES), 1)
    out = (jnp.where(lane == 0, total, 0.0)
           + jnp.where(lane == 1, ce_w, 0.0)
           + jnp.where(lane == 2, tri_w, 0.0)
           + jnp.where(lane == 3, cen_w, 0.0)
           + jnp.where(lane == 4, foc_w, 0.0)
           + jnp.where(lane == 5, rank_w, 0.0))
    out_ref[...] = out


# -------------------------------- wrapper ----------------------------------
@functools.partial(jax.jit, static_argnames=())
def reid_loss(score, target, feat_triplet, feat_center, feat_ranked, centers):
    # glue: coalesce the three feature heads + center parameter (same lane
    # width FEAT_DIM) into a single slab -> one HBM->VMEM DMA in the kernel.
    slab = jnp.concatenate([feat_triplet, feat_center, feat_ranked, centers],
                           axis=0).astype(jnp.float32)
    t_col = target.astype(jnp.int32).reshape(B, 1)
    t_row = target.astype(jnp.int32).reshape(1, B)

    vmem_spec = pl.BlockSpec(memory_space=pltpu.MemorySpace.VMEM)

    out = pl.pallas_call(
        reid_loss_kernel,
        out_shape=jax.ShapeDtypeStruct((1, OUT_LANES), jnp.float32),
        in_specs=[vmem_spec] * 4,
        out_specs=vmem_spec,
    )(score, slab, t_col, t_row)

    total = out[0, 0]
    loss_items = {
        "crossentropy": out[0, 1],
        "triplet": out[0, 2],
        "center": out[0, 3],
        "focal": out[0, 4],
        "ranked": out[0, 5],
    }
    return total, loss_items


# --------------------------------- main ------------------------------------
if __name__ == "__main__":
    key = jax.random.PRNGKey(0)
    k_score, k_ft, k_fc, k_fr, k_cen = jax.random.split(key, 5)

    score = jax.random.normal(k_score, (B, NUM_CLASSES), dtype=jnp.float32)
    # 4 identities, 2 samples each -> triplet / ranked losses are well defined
    target = jnp.array([0, 0, 1, 1, 2, 2, 3, 3], dtype=jnp.int32)
    feat_triplet = jax.random.normal(k_ft, (B, FEAT_DIM), dtype=jnp.float32)
    feat_center = jax.random.normal(k_fc, (B, FEAT_DIM), dtype=jnp.float32)
    feat_ranked = jax.random.normal(k_fr, (B, FEAT_DIM), dtype=jnp.float32)
    # CenterLoss parameter (torch init: randn(num_classes, feat_dim))
    centers = jax.random.normal(k_cen, (NUM_CLASSES, FEAT_DIM), dtype=jnp.float32)

    total, items = reid_loss(score, target, feat_triplet, feat_center,
                             feat_ranked, centers)
    total = jax.block_until_ready(total)
    jax.block_until_ready(items)

    print("KERNEL_OK")
</pallas_src>

<mosaic_0001>
module attributes {stable_mosaic.version = 11 : i64} {
  func.func @reid_loss_kernel(%arg0: memref<8x16xf32, #tpu.memory_space<vmem>>, %arg1: memref<40x32xf32, #tpu.memory_space<vmem>>, %arg2: memref<8x1xi32, #tpu.memory_space<vmem>>, %arg3: memref<1x8xi32, #tpu.memory_space<vmem>>, %arg4: memref<1x128xf32, #tpu.memory_space<vmem>>) attributes {dimension_semantics = [], scalar_prefetch = 0 : i64, scratch_operands = 0 : i64, tpu.core_type = #tpu.core_type<tc>} {
    %c0 = arith.constant 0 : index
    %c0_0 = arith.constant 0 : index
    %0 = vector.load %arg0[%c0, %c0_0] : memref<8x16xf32, #tpu.memory_space<vmem>>, vector<8x16xf32>
    %c0_1 = arith.constant 0 : index
    %c0_2 = arith.constant 0 : index
    %1 = vector.load %arg1[%c0_1, %c0_2] : memref<40x32xf32, #tpu.memory_space<vmem>>, vector<40x32xf32>
    %c0_3 = arith.constant 0 : index
    %c0_4 = arith.constant 0 : index
    %2 = vector.load %arg2[%c0_3, %c0_4] : memref<8x1xi32, #tpu.memory_space<vmem>>, vector<8x1xi32>
    %c0_5 = arith.constant 0 : index
    %c0_6 = arith.constant 0 : index
    %3 = vector.load %arg3[%c0_5, %c0_6] : memref<1x8xi32, #tpu.memory_space<vmem>>, vector<1x8xi32>
    %4 = vector.extract_strided_slice %1 {offsets = [0, 0], sizes = [8, 32], strides = [1, 1]} : vector<40x32xf32> to vector<8x32xf32>
    %5 = vector.extract_strided_slice %1 {offsets = [8, 0], sizes = [8, 32], strides = [1, 1]} : vector<40x32xf32> to vector<8x32xf32>
    %6 = vector.extract_strided_slice %1 {offsets = [16, 0], sizes = [8, 32], strides = [1, 1]} : vector<40x32xf32> to vector<8x32xf32>
    %7 = vector.extract_strided_slice %1 {offsets = [24, 0], sizes = [16, 32], strides = [1, 1]} : vector<40x32xf32> to vector<16x32xf32>
    %8 = tpu.iota {dimensions = array<i32: 1>} : vector<8x16xi32>
    %9 = vector.broadcast %2 : vector<8x1xi32> to vector<8x16xi32>
    %10 = arith.cmpi eq, %8, %9 : vector<8x16xi32>
    %11 = arith.extui %10 : vector<8x16xi1> to vector<8x16xi32>
    %12 = arith.sitofp %11 : vector<8x16xi32> to vector<8x16xf32>
    %13 = vector.broadcast %2 : vector<8x1xi32> to vector<8x8xi32>
    %14 = vector.broadcast %3 : vector<1x8xi32> to vector<8x8xi32>
    %15 = arith.cmpi eq, %13, %14 : vector<8x8xi32>
    %16 = arith.extui %15 : vector<8x8xi1> to vector<8x8xi32>
    %17 = arith.sitofp %16 : vector<8x8xi32> to vector<8x8xf32>
    %18 = tpu.iota {dimensions = array<i32: 0>} : vector<8x8xi32>
    %19 = tpu.iota {dimensions = array<i32: 1>} : vector<8x8xi32>
    %20 = arith.cmpi eq, %18, %19 : vector<8x8xi32>
    %21 = arith.extui %20 : vector<8x8xi1> to vector<8x8xi32>
    %22 = arith.sitofp %21 : vector<8x8xi32> to vector<8x8xf32>
    %cst = arith.constant dense<0xFF800000> : vector<8xf32>
    %23 = vector.multi_reduction <maximumf>, %0, %cst [1] : vector<8x16xf32> to vector<8xf32>
    %24 = vector.shape_cast %23 : vector<8xf32> to vector<8x1xf32>
    %25 = vector.broadcast %24 : vector<8x1xf32> to vector<8x16xf32>
    %26 = arith.subf %0, %25 : vector<8x16xf32>
    %27 = math.exp %26 : vector<8x16xf32>
    %cst_7 = arith.constant dense<0.000000e+00> : vector<8xf32>
    %28 = vector.multi_reduction <add>, %27, %cst_7 [1] : vector<8x16xf32> to vector<8xf32>
    %29 = vector.shape_cast %28 : vector<8xf32> to vector<8x1xf32>
    %30 = math.log %29 : vector<8x1xf32>
    %31 = vector.broadcast %30 : vector<8x1xf32> to vector<8x16xf32>
    %32 = arith.subf %26, %31 : vector<8x16xf32>
    %33 = math.exp %32 : vector<8x16xf32>
    %cst_8 = arith.constant 0.899999976 : f32
    %34 = vector.broadcast %cst_8 : f32 to vector<8x16xf32>
    %35 = arith.mulf %34, %12 : vector<8x16xf32>
    %cst_9 = arith.constant 6.250000e-03 : f32
    %36 = vector.broadcast %cst_9 : f32 to vector<8x16xf32>
    %37 = arith.addf %35, %36 : vector<8x16xf32>
    %cst_10 = arith.constant 0.000000e+00 : f32
    %38 = vector.broadcast %cst_10 : f32 to vector<8x16xf32>
    %39 = arith.subf %38, %37 : vector<8x16xf32>
    %40 = arith.mulf %39, %32 : vector<8x16xf32>
    %cst_11 = arith.constant dense<0.000000e+00> : vector<8xf32>
    %41 = vector.multi_reduction <add>, %40, %cst_11 [1] : vector<8x16xf32> to vector<8xf32>
    %42 = vector.shape_cast %41 : vector<8xf32> to vector<8x1xf32>
    %cst_12 = arith.constant dense<0.000000e+00> : vector<1xf32>
    %43 = vector.multi_reduction <add>, %42, %cst_12 [0] : vector<8x1xf32> to vector<1xf32>
    %44 = vector.shape_cast %43 : vector<1xf32> to vector<1x1xf32>
    %cst_13 = arith.constant 1.250000e-01 : f32
    %45 = vector.broadcast %cst_13 : f32 to vector<1x1xf32>
    %46 = arith.mulf %44, %45 : vector<1x1xf32>
    %cst_14 = arith.constant 1.000000e+00 : f32
    %47 = vector.broadcast %cst_14 : f32 to vector<8x16xf32>
    %48 = arith.subf %47, %33 : vector<8x16xf32>
    %49 = arith.mulf %48, %48 : vector<8x16xf32>
    %cst_15 = arith.constant 0.000000e+00 : f32
    %50 = vector.broadcast %cst_15 : f32 to vector<8x16xf32>
    %51 = arith.subf %50, %37 : vector<8x16xf32>
    %52 = arith.mulf %51, %49 : vector<8x16xf32>
    %53 = arith.mulf %52, %32 : vector<8x16xf32>
    %cst_16 = arith.constant dense<0.000000e+00> : vector<8xf32>
    %54 = vector.multi_reduction <add>, %53, %cst_16 [1] : vector<8x16xf32> to vector<8xf32>
    %55 = vector.shape_cast %54 : vector<8xf32> to vector<8x1xf32>
    %cst_17 = arith.constant dense<0.000000e+00> : vector<1xf32>
    %56 = vector.multi_reduction <add>, %55, %cst_17 [0] : vector<8x1xf32> to vector<1xf32>
    %57 = vector.shape_cast %56 : vector<1xf32> to vector<1x1xf32>
    %cst_18 = arith.constant 1.250000e-01 : f32
    %58 = vector.broadcast %cst_18 : f32 to vector<1x1xf32>
    %59 = arith.mulf %57, %58 : vector<1x1xf32>
    %cst_19 = arith.constant dense<0.000000e+00> : vector<8x8xf32>
    %60 = tpu.matmul %4, %4, %cst_19 {dimension_numbers = #tpu.dot_dimension_numbers<[1], [1], [0], [0], [0, 0, 1, 0], [], []>} : vector<8x32xf32>, vector<8x32xf32>, vector<8x8xf32> -> vector<8x8xf32>
    %61 = arith.mulf %60, %22 : vector<8x8xf32>
    %cst_20 = arith.constant dense<0.000000e+00> : vector<8xf32>
    %62 = vector.multi_reduction <add>, %61, %cst_20 [1] : vector<8x8xf32> to vector<8xf32>
    %63 = vector.shape_cast %62 : vector<8xf32> to vector<8x1xf32>
    %cst_21 = arith.constant dense<0.000000e+00> : vector<8xf32>
    %64 = vector.multi_reduction <add>, %61, %cst_21 [0] : vector<8x8xf32> to vector<8xf32>
    %65 = vector.shape_cast %64 : vector<8xf32> to vector<1x8xf32>
    %66 = vector.broadcast %63 : vector<8x1xf32> to vector<8x8xf32>
    %67 = vector.broadcast %65 : vector<1x8xf32> to vector<8x8xf32>
    %68 = arith.addf %66, %67 : vector<8x8xf32>
    %cst_22 = arith.constant 2.000000e+00 : f32
    %69 = vector.broadcast %cst_22 : f32 to vector<8x8xf32>
    %70 = arith.mulf %69, %60 : vector<8x8xf32>
    %71 = arith.subf %68, %70 : vector<8x8xf32>
    %cst_23 = arith.constant 9.99999996E-13 : f32
    %72 = vector.broadcast %cst_23 : f32 to vector<8x8xf32>
    %73 = arith.maximumf %71, %72 : vector<8x8xf32>
    %74 = math.sqrt %73 : vector<8x8xf32>
    %cst_24 = arith.constant 5.000000e-01 : f32
    %75 = vector.broadcast %cst_24 : f32 to vector<8x8xf32>
    %76 = arith.cmpf ogt, %17, %75 : vector<8x8xf32>
    %cst_25 = arith.constant -1.000000e+30 : f32
    %77 = vector.broadcast %cst_25 : f32 to vector<8x8xf32>
    %78 = arith.select %76, %74, %77 : vector<8x8xi1>, vector<8x8xf32>
    %cst_26 = arith.constant dense<0xFF800000> : vector<8xf32>
    %79 = vector.multi_reduction <maximumf>, %78, %cst_26 [1] : vector<8x8xf32> to vector<8xf32>
    %80 = vector.shape_cast %79 : vector<8xf32> to vector<8x1xf32>
    %cst_27 = arith.constant 5.000000e-01 : f32
    %81 = vector.broadcast %cst_27 : f32 to vector<8x8xf32>
    %82 = arith.cmpf olt, %17, %81 : vector<8x8xf32>
    %cst_28 = arith.constant 1.000000e+30 : f32
    %83 = vector.broadcast %cst_28 : f32 to vector<8x8xf32>
    %84 = arith.select %82, %74, %83 : vector<8x8xi1>, vector<8x8xf32>
    %cst_29 = arith.constant dense<0x7F800000> : vector<8xf32>
    %85 = vector.multi_reduction <minimumf>, %84, %cst_29 [1] : vector<8x8xf32> to vector<8xf32>
    %86 = vector.shape_cast %85 : vector<8xf32> to vector<8x1xf32>
    %87 = arith.subf %80, %86 : vector<8x1xf32>
    %cst_30 = arith.constant 3.000000e-01 : f32
    %88 = vector.broadcast %cst_30 : f32 to vector<8x1xf32>
    %89 = arith.addf %87, %88 : vector<8x1xf32>
    %cst_31 = arith.constant 0.000000e+00 : f32
    %90 = vector.broadcast %cst_31 : f32 to vector<8x1xf32>
    %91 = arith.maximumf %89, %90 : vector<8x1xf32>
    %cst_32 = arith.constant dense<0.000000e+00> : vector<1xf32>
    %92 = vector.multi_reduction <add>, %91, %cst_32 [0] : vector<8x1xf32> to vector<1xf32>
    %93 = vector.shape_cast %92 : vector<1xf32> to vector<1x1xf32>
    %cst_33 = arith.constant 1.250000e-01 : f32
    %94 = vector.broadcast %cst_33 : f32 to vector<1x1xf32>
    %95 = arith.mulf %93, %94 : vector<1x1xf32>
    %96 = arith.mulf %5, %5 : vector<8x32xf32>
    %cst_34 = arith.constant dense<0.000000e+00> : vector<8xf32>
    %97 = vector.multi_reduction <add>, %96, %cst_34 [1] : vector<8x32xf32> to vector<8xf32>
    %98 = vector.shape_cast %97 : vector<8xf32> to vector<8x1xf32>
    %cst_35 = arith.constant 1.000000e+00 : f32
    %99 = vector.broadcast %cst_35 : f32 to vector<1x32xf32>
    %100 = arith.mulf %7, %7 : vector<16x32xf32>
    %cst_36 = arith.constant dense<0.000000e+00> : vector<1x16xf32>
    %101 = tpu.matmul %99, %100, %cst_36 {dimension_numbers = #tpu.dot_dimension_numbers<[1], [1], [0], [0], [0, 0, 1, 0], [], []>} : vector<1x32xf32>, vector<16x32xf32>, vector<1x16xf32> -> vector<1x16xf32>
    %102 = vector.broadcast %98 : vector<8x1xf32> to vector<8x16xf32>
    %103 = vector.broadcast %101 : vector<1x16xf32> to vector<8x16xf32>
    %104 = arith.addf %102, %103 : vector<8x16xf32>
    %cst_37 = arith.constant dense<0.000000e+00> : vector<8x16xf32>
    %105 = tpu.matmul %5, %7, %cst_37 {dimension_numbers = #tpu.dot_dimension_numbers<[1], [1], [0], [0], [0, 0, 1, 0], [], []>} : vector<8x32xf32>, vector<16x32xf32>, vector<8x16xf32> -> vector<8x16xf32>
    %cst_38 = arith.constant 2.000000e+00 : f32
    %106 = vector.broadcast %cst_38 : f32 to vector<8x16xf32>
    %107 = arith.mulf %106, %105 : vector<8x16xf32>
    %108 = arith.subf %104, %107 : vector<8x16xf32>
    %109 = arith.mulf %108, %12 : vector<8x16xf32>
    %cst_39 = arith.constant 9.99999996E-13 : f32
    %cst_40 = arith.constant 9.99999995E+11 : f32
    %110 = vector.broadcast %cst_39 : f32 to vector<8x16xf32>
    %111 = arith.maximumf %110, %109 : vector<8x16xf32>
    %112 = vector.broadcast %cst_40 : f32 to vector<8x16xf32>
    %113 = arith.minimumf %112, %111 : vector<8x16xf32>
    %cst_41 = arith.constant dense<0.000000e+00> : vector<8xf32>
    %114 = vector.multi_reduction <add>, %113, %cst_41 [1] : vector<8x16xf32> to vector<8xf32>
    %115 = vector.shape_cast %114 : vector<8xf32> to vector<8x1xf32>
    %cst_42 = arith.constant dense<0.000000e+00> : vector<1xf32>
    %116 = vector.multi_reduction <add>, %115, %cst_42 [0] : vector<8x1xf32> to vector<1xf32>
    %117 = vector.shape_cast %116 : vector<1xf32> to vector<1x1xf32>
    %cst_43 = arith.constant 1.250000e-01 : f32
    %118 = vector.broadcast %cst_43 : f32 to vector<1x1xf32>
    %119 = arith.mulf %117, %118 : vector<1x1xf32>
    %120 = arith.mulf %6, %6 : vector<8x32xf32>
    %cst_44 = arith.constant dense<0.000000e+00> : vector<8xf32>
    %121 = vector.multi_reduction <add>, %120, %cst_44 [1] : vector<8x32xf32> to vector<8xf32>
    %122 = vector.shape_cast %121 : vector<8xf32> to vector<8x1xf32>
    %123 = math.sqrt %122 : vector<8x1xf32>
    %cst_45 = arith.constant 9.99999996E-13 : f32
    %124 = vector.broadcast %cst_45 : f32 to vector<8x1xf32>
    %125 = arith.addf %123, %124 : vector<8x1xf32>
    %126 = tpu.reciprocal %125 {approx = true} : vector<8x1xf32> -> vector<8x1xf32>
    %127 = vector.broadcast %126 : vector<8x1xf32> to vector<8x32xf32>
    %128 = arith.mulf %6, %127 : vector<8x32xf32>
    %cst_46 = arith.constant dense<0.000000e+00> : vector<8x8xf32>
    %129 = tpu.matmul %128, %128, %cst_46 {dimension_numbers = #tpu.dot_dimension_numbers<[1], [1], [0], [0], [0, 0, 1, 0], [], []>} : vector<8x32xf32>, vector<8x32xf32>, vector<8x8xf32> -> vector<8x8xf32>
    %130 = arith.mulf %129, %22 : vector<8x8xf32>
    %cst_47 = arith.constant dense<0.000000e+00> : vector<8xf32>
    %131 = vector.multi_reduction <add>, %130, %cst_47 [1] : vector<8x8xf32> to vector<8xf32>
    %132 = vector.shape_cast %131 : vector<8xf32> to vector<8x1xf32>
    %cst_48 = arith.constant dense<0.000000e+00> : vector<8xf32>
    %133 = vector.multi_reduction <add>, %130, %cst_48 [0] : vector<8x8xf32> to vector<8xf32>
    %134 = vector.shape_cast %133 : vector<8xf32> to vector<1x8xf32>
    %135 = vector.broadcast %132 : vector<8x1xf32> to vector<8x8xf32>
    %136 = vector.broadcast %134 : vector<1x8xf32> to vector<8x8xf32>
    %137 = arith.addf %135, %136 : vector<8x8xf32>
    %cst_49 = arith.constant 2.000000e+00 : f32
    %138 = vector.broadcast %cst_49 : f32 to vector<8x8xf32>
    %139 = arith.mulf %138, %129 : vector<8x8xf32>
    %140 = arith.subf %137, %139 : vector<8x8xf32>
    %cst_50 = arith.constant 9.99999996E-13 : f32
    %141 = vector.broadcast %cst_50 : f32 to vector<8x8xf32>
    %142 = arith.maximumf %140, %141 : vector<8x8xf32>
    %143 = math.sqrt %142 : vector<8x8xf32>
    %cst_51 = arith.constant 1.000000e+00 : f32
    %144 = vector.broadcast %cst_51 : f32 to vector<8x8xf32>
    %145 = arith.subf %144, %22 : vector<8x8xf32>
    %146 = arith.mulf %17, %145 : vector<8x8xf32>
    %cst_52 = arith.constant 1.000000e+00 : f32
    %147 = vector.broadcast %cst_52 : f32 to vector<8x8xf32>
    %148 = arith.subf %147, %17 : vector<8x8xf32>
    %cst_53 = arith.constant 1.300000e+00 : f32
    %149 = vector.broadcast %cst_53 : f32 to vector<8x8xf32>
    %150 = arith.addf %143, %149 : vector<8x8xf32>
    %cst_54 = arith.constant 2.000000e+00 : f32
    %151 = vector.broadcast %cst_54 : f32 to vector<8x8xf32>
    %152 = arith.subf %150, %151 : vector<8x8xf32>
    %cst_55 = arith.constant 0.000000e+00 : f32
    %153 = vector.broadcast %cst_55 : f32 to vector<8x8xf32>
    %154 = arith.maximumf %152, %153 : vector<8x8xf32>
    %155 = arith.mulf %154, %146 : vector<8x8xf32>
    %cst_56 = arith.constant 0.000000e+00 : f32
    %156 = vector.broadcast %cst_56 : f32 to vector<8x8xf32>
    %157 = arith.cmpf ogt, %155, %156 : vector<8x8xf32>
    %cst_57 = arith.constant 1.000000e+00 : f32
    %cst_58 = arith.constant 0.000000e+00 : f32
    %158 = vector.broadcast %cst_57 : f32 to vector<8x8xf32>
    %159 = vector.broadcast %cst_58 : f32 to vector<8x8xf32>
    %160 = arith.select %157, %158, %159 : vector<8x8xi1>, vector<8x8xf32>
    %cst_59 = arith.constant dense<0.000000e+00> : vector<8xf32>
    %161 = vector.multi_reduction <add>, %160, %cst_59 [1] : vector<8x8xf32> to vector<8xf32>
    %162 = vector.shape_cast %161 : vector<8xf32> to vector<8x1xf32>
    %cst_60 = arith.constant 9.99999974E-6 : f32
    %163 = vector.broadcast %cst_60 : f32 to vector<8x1xf32>
    %164 = arith.addf %162, %163 : vector<8x1xf32>
    %cst_61 = arith.constant dense<0.000000e+00> : vector<8xf32>
    %165 = vector.multi_reduction <add>, %155, %cst_61 [1] : vector<8x8xf32> to vector<8xf32>
    %166 = vector.shape_cast %165 : vector<8xf32> to vector<8x1xf32>
    %167 = tpu.reciprocal %164 {approx = true} : vector<8x1xf32> -> vector<8x1xf32>
    %168 = arith.mulf %166, %167 : vector<8x1xf32>
    %cst_62 = arith.constant 2.000000e+00 : f32
    %169 = vector.broadcast %cst_62 : f32 to vector<8x8xf32>
    %170 = arith.cmpf olt, %143, %169 : vector<8x8xf32>
    %cst_63 = arith.constant 1.000000e+00 : f32
    %cst_64 = arith.constant 0.000000e+00 : f32
    %171 = vector.broadcast %cst_63 : f32 to vector<8x8xf32>
    %172 = vector.broadcast %cst_64 : f32 to vector<8x8xf32>
    %173 = arith.select %170, %171, %172 : vector<8x8xi1>, vector<8x8xf32>
    %174 = arith.mulf %148, %173 : vector<8x8xf32>
    %cst_65 = arith.constant 2.000000e+00 : f32
    %175 = vector.broadcast %cst_65 : f32 to vector<8x8xf32>
    %176 = arith.subf %175, %143 : vector<8x8xf32>
    %cst_66 = arith.constant 1.000000e+00 : f32
    %177 = vector.broadcast %cst_66 : f32 to vector<8x8xf32>
    %178 = arith.mulf %177, %176 : vector<8x8xf32>
    %179 = math.exp %178 : vector<8x8xf32>
    %180 = arith.mulf %179, %174 : vector<8x8xf32>
    %cst_67 = arith.constant dense<0.000000e+00> : vector<8xf32>
    %181 = vector.multi_reduction <add>, %180, %cst_67 [1] : vector<8x8xf32> to vector<8xf32>
    %182 = vector.shape_cast %181 : vector<8xf32> to vector<8x1xf32>
    %cst_68 = arith.constant 9.99999974E-6 : f32
    %183 = vector.broadcast %cst_68 : f32 to vector<8x1xf32>
    %184 = arith.addf %182, %183 : vector<8x1xf32>
    %cst_69 = arith.constant 2.000000e+00 : f32
    %185 = vector.broadcast %cst_69 : f32 to vector<8x8xf32>
    %186 = arith.subf %185, %143 : vector<8x8xf32>
    %187 = arith.mulf %186, %180 : vector<8x8xf32>
    %cst_70 = arith.constant dense<0.000000e+00> : vector<8xf32>
    %188 = vector.multi_reduction <add>, %187, %cst_70 [1] : vector<8x8xf32> to vector<8xf32>
    %189 = vector.shape_cast %188 : vector<8xf32> to vector<8x1xf32>
    %190 = tpu.reciprocal %184 {approx = true} : vector<8x1xf32> -> vector<8x1xf32>
    %191 = arith.mulf %189, %190 : vector<8x1xf32>
    %192 = arith.addf %168, %191 : vector<8x1xf32>
    %cst_71 = arith.constant dense<0.000000e+00> : vector<1xf32>
    %193 = vector.multi_reduction <add>, %192, %cst_71 [0] : vector<8x1xf32> to vector<1xf32>
    %194 = vector.shape_cast %193 : vector<1xf32> to vector<1x1xf32>
    %cst_72 = arith.constant 1.250000e-01 : f32
    %195 = vector.broadcast %cst_72 : f32 to vector<1x1xf32>
    %196 = arith.mulf %194, %195 : vector<1x1xf32>
    %cst_73 = arith.constant 1.000000e+00 : f32
    %197 = vector.broadcast %cst_73 : f32 to vector<1x1xf32>
    %198 = arith.mulf %197, %46 : vector<1x1xf32>
    %cst_74 = arith.constant 1.000000e+00 : f32
    %199 = vector.broadcast %cst_74 : f32 to vector<1x1xf32>
    %200 = arith.mulf %199, %95 : vector<1x1xf32>
    %cst_75 = arith.constant 5.000000e-04 : f32
    %201 = vector.broadcast %cst_75 : f32 to vector<1x1xf32>
    %202 = arith.mulf %201, %119 : vector<1x1xf32>
    %cst_76 = arith.constant 2.500000e-01 : f32
    %203 = vector.broadcast %cst_76 : f32 to vector<1x1xf32>
    %204 = arith.mulf %203, %59 : vector<1x1xf32>
    %cst_77 = arith.constant 4.000000e-01 : f32
    %205 = vector.broadcast %cst_77 : f32 to vector<1x1xf32>
    %206 = arith.mulf %205, %196 : vector<1x1xf32>
    %207 = arith.addf %198, %200 : vector<1x1xf32>
    %208 = arith.addf %207, %202 : vector<1x1xf32>
    %209 = arith.addf %208, %204 : vector<1x1xf32>
    %210 = arith.addf %209, %206 : vector<1x1xf32>
    %211 = tpu.iota {dimensions = array<i32: 1>} : vector<1x128xi32>
    %c0_i32 = arith.constant 0 : i32
    %212 = vector.broadcast %c0_i32 : i32 to vector<1x128xi32>
    %213 = arith.cmpi eq, %211, %212 : vector<1x128xi32>
    %cst_78 = arith.constant 0.000000e+00 : f32
    %214 = vector.shape_cast %210 : vector<1x1xf32> to vector<1x1xf32>
    %215 = vector.broadcast %214 : vector<1x1xf32> to vector<1x128xf32>
    %216 = vector.broadcast %cst_78 : f32 to vector<1x128xf32>
    %217 = arith.select %213, %215, %216 : vector<1x128xi1>, vector<1x128xf32>
    %c1_i32 = arith.constant 1 : i32
    %218 = vector.broadcast %c1_i32 : i32 to vector<1x128xi32>
    %219 = arith.cmpi eq, %211, %218 : vector<1x128xi32>
    %cst_79 = arith.constant 0.000000e+00 : f32
    %220 = vector.shape_cast %198 : vector<1x1xf32> to vector<1x1xf32>
    %221 = vector.broadcast %220 : vector<1x1xf32> to vector<1x128xf32>
    %222 = vector.broadcast %cst_79 : f32 to vector<1x128xf32>
    %223 = arith.select %219, %221, %222 : vector<1x128xi1>, vector<1x128xf32>
    %224 = arith.addf %217, %223 : vector<1x128xf32>
    %c2_i32 = arith.constant 2 : i32
    %225 = vector.broadcast %c2_i32 : i32 to vector<1x128xi32>
    %226 = arith.cmpi eq, %211, %225 : vector<1x128xi32>
    %cst_80 = arith.constant 0.000000e+00 : f32
    %227 = vector.shape_cast %200 : vector<1x1xf32> to vector<1x1xf32>
    %228 = vector.broadcast %227 : vector<1x1xf32> to vector<1x128xf32>
    %229 = vector.broadcast %cst_80 : f32 to vector<1x128xf32>
    %230 = arith.select %226, %228, %229 : vector<1x128xi1>, vector<1x128xf32>
    %231 = arith.addf %224, %230 : vector<1x128xf32>
    %c3_i32 = arith.constant 3 : i32
    %232 = vector.broadcast %c3_i32 : i32 to vector<1x128xi32>
    %233 = arith.cmpi eq, %211, %232 : vector<1x128xi32>
    %cst_81 = arith.constant 0.000000e+00 : f32
    %234 = vector.shape_cast %202 : vector<1x1xf32> to vector<1x1xf32>
    %235 = vector.broadcast %234 : vector<1x1xf32> to vector<1x128xf32>
    %236 = vector.broadcast %cst_81 : f32 to vector<1x128xf32>
    %237 = arith.select %233, %235, %236 : vector<1x128xi1>, vector<1x128xf32>
    %238 = arith.addf %231, %237 : vector<1x128xf32>
    %c4_i32 = arith.constant 4 : i32
    %239 = vector.broadcast %c4_i32 : i32 to vector<1x128xi32>
    %240 = arith.cmpi eq, %211, %239 : vector<1x128xi32>
    %cst_82 = arith.constant 0.000000e+00 : f32
    %241 = vector.shape_cast %204 : vector<1x1xf32> to vector<1x1xf32>
    %242 = vector.broadcast %241 : vector<1x1xf32> to vector<1x128xf32>
    %243 = vector.broadcast %cst_82 : f32 to vector<1x128xf32>
    %244 = arith.select %240, %242, %243 : vector<1x128xi1>, vector<1x128xf32>
    %245 = arith.addf %238, %244 : vector<1x128xf32>
    %c5_i32 = arith.constant 5 : i32
    %246 = vector.broadcast %c5_i32 : i32 to vector<1x128xi32>
    %247 = arith.cmpi eq, %211, %246 : vector<1x128xi32>
    %cst_83 = arith.constant 0.000000e+00 : f32
    %248 = vector.shape_cast %206 : vector<1x1xf32> to vector<1x1xf32>
    %249 = vector.broadcast %248 : vector<1x1xf32> to vector<1x128xf32>
    %250 = vector.broadcast %cst_83 : f32 to vector<1x128xf32>
    %251 = arith.select %247, %249, %250 : vector<1x128xi1>, vector<1x128xf32>
    %252 = arith.addf %245, %251 : vector<1x128xf32>
    %c0_84 = arith.constant 0 : index
    %c0_85 = arith.constant 0 : index
    %253 = vector.load %arg4[%c0_84, %c0_85] : memref<1x128xf32, #tpu.memory_space<vmem>>, vector<1x128xf32>
    tpu.vector_store %arg4[%c0_84, %c0_85], %252 {strides = array<i32>} : memref<1x128xf32, #tpu.memory_space<vmem>>, vector<1x128xf32>,
    return
  }
}

</mosaic_0001>

<bundles_post_ra>
// kernel: reid_loss.1
= control target key start
LH: loop header
LB: loop body
LE: loop exit
PB: predicated region body
PF: predicated region fallthrough
CT: control target
= control target key end

     0   :  { %vm88_vm0 = vcmask 261120   ;;  %v652_v1 = vmov 0.0   ;;  %vm653_vm1 = vmmov 0   ;;  %v654_v10 = vmov 0.0|0.0   ;;  %s771_s1 = inlined_call_operand.vmem [shape: f32[40,32], index: 1, kind: input, shape index: {}]   ;;  %s772_s0 = inlined_call_operand.vmem [shape: f32[8,16], index: 0, kind: input, shape index: {}]   ;;  %s773_s2 = inlined_call_operand.vmem [shape: s32[8,1], index: 2, kind: input, shape index: {}]   ;;  %s774_s3 = inlined_call_operand.vmem [shape: s32[1,8], index: 3, kind: input, shape index: {}]   ;;  %s775_s4 = inlined_call_operand.vmem [shape: f32[1,128], index: 4, kind: output, shape index: {}]  }
   0x1   :  { %v20_v0 = vld [vmem:[%s771_s1 + $0x10] sm:$0xff]  ;;  %593 = vmatprep.subr.mxu0 %v652_v1  ;;  %v18_v2 = vld [vmem:[%s771_s1] sm:$0xff]  ;;  %595 = vmatprep.mubr.msk.f32.mxu0 %vm653_vm1, %v652_v1  ;;  %v21_v5 = vld [vmem:[%s771_s1 + $0x18] sm:$0xff]  ;;  %v655_v12 = vmov 1.0   ;;  %vm45_vm3 = vcmask 130048   ;;  %v25_v25 = vlaneseq  ;;  %vm163_vm7 = vcmask 64512  }
   0x2   :  { %v388_v3 = vmul.f32 %v20_v0, %v20_v0  ;;  %594 = vmatpush3.xpose.msk.msra.mxu0 %vm88_vm0, %v18_v2  ;;  %602 = vmatprep.mubr.msk.f32.mxu1 %vm653_vm1, %v652_v1  ;;  %v22_v6 = vld [vmem:[%s771_s1 + $0x20] sm:$0xff]  ;;  %v208_v7 = vmul.f32 %v21_v5, %v21_v5  ;;  %vm619_vm2 = vmpackc.low %vm88_vm0, %vm88_vm0  ;;  %v19_v13 = vld [vmem:[%s771_s1 + $0x8] sm:$0xff]  ;;  %v656_v39 = vmov 0  }
   0x3   :  { %v209_v8 = vmul.f32 %v22_v6, %v22_v6  ;;  %v622_v9 = vpack.c.bf16 %v22_v6, %v21_v5  ;;  %617 = vmatprep.subr.bf16.mxu1 %v654_v10  ;;  %621 = vmatprep.subr.bf16.mxu0 %v654_v10  ;;  %v17_v14 = vld [vmem:[%s772_s0] sm:$0xff]  ;;  %v720_v26 = vand.u32 127, %v25_v25  ;;  %v41_v27 = vshrl.u32 %v25_v25, 7 }
   0x4   :  { %v389_v4 = vsel %vm88_vm0, %v388_v3, 0.0  ;;  %v46_v15 = vsel %vm45_vm3, %v17_v14, -inf  ;;  %v204_v31 = vmul.f32 %v19_v13, %v19_v13  ;;  %630 = vset.pattern.permute.xlu1 %v656_v39  ;;  %631 = vset.pattern.permute.xlu0 %v656_v39 }
   0x5   :  { %390 = vadd.xlane.f32.xlu0 %v389_v4  ;;  %596 = vmatmul.mubr.msk.f32.vlgmr.msra.gmra.mrb[0].mxu0 %vm88_vm0, %v18_v2  ;;  %v618_v11 = vpack.c.bf16 %v209_v8, %v208_v7  ;;  %vm42_vm6 = vcmp.eq.s32.totalorder %v41_v27, %v720_v26  ;;  %v291_v47 = vsub.s32 0, %v41_v27  ;;  %v23_v2 = vld [vmem:[%s773_s2] sm:$0xff] }
   0x6   :  { %609 = vmatprep.mubr.msk.f32.mxu0 %vm653_vm1, %v652_v1  ;;  %624 = vmatpush3.bf16.xpose.msk.msra.mxu0 %vm619_vm2, %v622_v9  ;;  %v724_v28 = vsel %vm42_vm6, 1.0, %v652_v1  ;;  %v205_v34 = vsel %vm88_vm0, %v204_v31, 0.0  ;;  %vm557_vm6 = vcmp.eq.s32.totalorder %v720_v26, 4 }
   0x7   :  { %620 = vmatpush3.bf16.xpose.msk.msra.mxu1 %vm619_vm2, %v618_v11  ;;  %vm548_vm2 = vcmp.eq.s32.totalorder %v720_v26, 1 }
   0x8   :  { %612 = vmatprep.subr.mxu1 %v652_v1 }
   0x9   :  { %47 = vmax.xlane.f32.xlu0 %v46_v15 }
   0xd   :  { %610 = vmatmul.mubr.msk.f32.vlgmr.msra.gmra.mrb[2].mxu0 %vm88_vm0, %v19_v13 }
   0xe   :  { %603 = vmatmul.mubr.msk.f32.vlgmr.msra.gmra.mrb[0].mxu1 %vm88_vm0, %v655_v12 }
   0xf   :  { %614 = vmatprep.mubr.msk.f32.mxu1 %vm653_vm1, %v652_v1 }
  0x92   :  { %v391_v16 = vpop.xlane.xlu0 %390 }
  0x93   :  { %632 = vrsqrt.f32 %v391_v16  ;;  %vm394_vm4 = vcmp.eq.f32.partialorder %v391_v16, inf  ;;  %v397_v19 = vand.u32 2147483648, %v391_v16  ;;  %vm396_vm5 = vcmp.eq.f32.partialorder %v391_v16, 0.0 }
  0x96   :  { %v48_v45 = vpop.xlane.xlu0 %47 }
  0x97   :  { %v49_v57 = vsub.f32 %v17_v14, %v48_v45 }
  0x99   :  { %v50_v58 = vmul.f32 1.442695, %v49_v57 }
  0x9d   :  { %v633_v17 = vpop.eup %632 }
  0x9e   :  { %v393_v18 = vmul.f32 %v633_v17, %v391_v16 }
  0xa0   :  { %v395_v20 = vsel %vm394_vm4, %v391_v16, %v393_v18  ;;  %v569_v18 = vld [vmem:[%s774_s3] ss:$0 sm:$0xff]  ;;  %vm551_vm4 = vcmp.eq.s32.totalorder %v720_v26, 2 }
  0xa1   :  { %v398_v21 = vsel %vm396_vm5, %v397_v19, %v395_v20  ;;  %vm554_vm5 = vcmp.eq.s32.totalorder %v720_v26, 3 }
  0xa2   :  { %v399_v22 = vadd.f32 1e-12, %v398_v21 }
  0xa4   :  { %634 = vrcp.f32 %v399_v22 }
  0xa5   :  { %636 = vpow2.f32 %v50_v58 }
  0xae   :  { %v635_v23 = vpop.eup %634 }
  0xaf   :  { %v401_v24 = vmul.f32 %v635_v23, %v20_v0  ;;  %v637_v62 = vpop.eup %636 }
  0xb0   :  { %v52_v0 = vsel %vm45_vm3, %v637_v62, 0.0 }
  0xb1   :  { %613 = vmatpush3.xpose.msk.msra.mxu1 %vm88_vm0, %v401_v24 }
  0xb4   :  { %615 = vmatmul.mubr.msk.f32.vlgmr.msra.gmra.mrb[2].mxu1 %vm88_vm0, %v401_v24 }
  0xd8   :  { %v158_v29 = vpop.f32.mrb[0].mxu0 }
  0xd9   :  { %v162_v30 = vmul.f32 %v724_v28, %v158_v29  ;;  %v597_v32 = vpop.f32.mrb[1].mxu0  ;;  %v174_v48 = vmul.f32 2.0, %v158_v29 }
  0xdb   :  { %v164_v33 = vsel %vm163_vm7, %v162_v30, 0.0 }
  0xdc   :  { %165 = vadd.xlane.f32.xlu0 %v164_v33  ;;  %v167_v40 = vrot.slane %v164_v33, 4 }
  0xde   :  { %v168_v41 = vadd.f32 %v167_v40, %v164_v33 }
  0xe0   :  { %206 = vadd.xlane.f32.xlu0 %v205_v34  ;;  %v369_v37 = vpop.f32.mrb[2].mxu0  ;;  %v169_v42 = vrot.slane %v168_v41, 2 }
  0xe1   :  { %v285_v35 = vpop.f32.mrb[0].mxu1  ;;  %v611_v38 = vpop.f32.mrb[3].mxu0  ;;  %v729_v53 = vmul.f32 2.0, %v369_v37 }
  0xe2   :  { %v604_v36 = vpop.f32.mrb[1].mxu1  ;;  %v170_v43 = vadd.f32 %v169_v42, %v168_v41  ;;  %v292_v51 = vrot.slane %v285_v35, %v291_v47 }
  0xe4   :  { %v171_v44 = vrot.slane %v170_v43, 1 }
  0xe6   :  { %v172_v46 = vadd.f32 %v171_v44, %v170_v43  ;;  %v496_v44 = vsub.f32 1.0, %v724_v28 }
 0x169   :  { %v166_v49 = vpop.xlane.xlu0 %165 }
 0x16a   :  { %v173_v50 = vadd.f32 %v172_v46, %v166_v49 }
 0x16c   :  { %v175_v52 = vsub.f32 %v173_v50, %v174_v48 }
 0x16d   :  { %v207_v54 = vpop.xlane.xlu0 %206 }
 0x16e   :  { %v731_v55 = vadd.f32 %v292_v51, %v207_v54  ;;  %v176_v5 = vmax.f32 %v175_v52, 1e-12 }
 0x170   :  { %v374_v56 = vsub.f32 %v731_v55, %v729_v53  ;;  %638 = vrsqrt.f32 %v176_v5  ;;  %vm179_vm8 = vcmp.eq.f32.partialorder %v176_v5, inf  ;;  %v182_v19 = vand.u32 2147483648, %v176_v5 }
 0x171   :  { %vm181_vm9 = vcmp.eq.f32.partialorder %v176_v5, 0.0 }
 0x17a   :  { %v639_v11 = vpop.eup %638 }
 0x17b   :  { %v178_v16 = vmul.f32 %v639_v11, %v176_v5 }
 0x17d   :  { %v180_v21 = vsel %vm179_vm8, %v176_v5, %v178_v16 }
 0x17e   :  { %v183_v25 = vsel %vm181_vm9, %v182_v19, %v180_v21 }
 0x187   :  { %v471_v59 = vpop.f32.mrb[2].mxu1 }
 0x188   :  { %v475_v60 = vmul.f32 %v724_v28, %v471_v59  ;;  %v616_v61 = vpop.f32.mrb[3].mxu1  ;;  %v486_v12 = vmul.f32 2.0, %v471_v59 }
 0x18a   :  { %v476_v63 = vsel %vm163_vm7, %v475_v60, 0.0 }
 0x18b   :  { %477 = vadd.xlane.f32.xlu1 %v476_v63  ;;  %v479_v3 = vrot.slane %v476_v63, 4 }
 0x18d   :  { %v480_v4 = vadd.f32 %v479_v3, %v476_v63 }
 0x18f   :  { %53 = vadd.xlane.f32.xlu1 %v52_v0  ;;  %v481_v6 = vrot.slane %v480_v4, 2 }
 0x191   :  { %v482_v7 = vadd.f32 %v481_v6, %v480_v4 }
 0x193   :  { %v483_v8 = vrot.slane %v482_v7, 1 }
 0x195   :  { %v484_v9 = vadd.f32 %v483_v8, %v482_v7 }
 0x1a0   :  { %28 = vperm.xlu1 %630, %v23_v2  }
 0x218   :  { %v478_v10 = vpop.xlane.xlu1 %477 }
 0x219   :  { %v485_v13 = vadd.f32 %v484_v9, %v478_v10 }
 0x21b   :  { %v487_v14 = vsub.f32 %v485_v13, %v486_v12 }
 0x21c   :  { %v54_v15 = vpop.xlane.xlu1 %53 }
 0x21d   :  { %v488_v17 = vmax.f32 %v487_v14, 1e-12  ;;  %640 = vlog2.f32 %v54_v15 }
 0x21f   :  { %642 = vrsqrt.f32 %v488_v17  ;;  %vm491_vm14 = vcmp.eq.f32.partialorder %v488_v17, inf  ;;  %v494_v39 = vand.u32 2147483648, %v488_v17  ;;  %vm493_vm15 = vcmp.eq.f32.partialorder %v488_v17, 0.0 }
 0x220   :  { %v29_v20 = vpop.permute.xlu1 %28 }
 0x221   :  { %vm30_vm10 = vcmp.eq.s32.totalorder %v720_v26, %v29_v20  ;;  %vm37_vm11 = vcmp.eq.s32.totalorder %v29_v20, %v569_v18 }
 0x222   :  { %v568_v22 = vsel %vm30_vm10, 1.0, %v652_v1  ;;  %v570_v23 = vsel %vm37_vm11, 1.0, %v652_v1 }
 0x223   :  { %v60_v24 = vmul.f32 0.9, %v568_v22  ;;  %vm189_vm12 = vcmp.lt.f32.partialorder %v570_v23, 0.5  ;;  %vm184_vm13 = vcmp.gt.f32.partialorder %v570_v23, 0.5  ;;  %v497_v50 = vmul.f32 %v570_v23, %v496_v44 }
 0x224   :  { %v190_v27 = vsel %vm189_vm12, %v183_v25, 1e+30  ;;  %v185_v29 = vsel %vm184_vm13, %v183_v25, -1e+30  ;;  %v375_v28 = vmul.f32 %v568_v22, %v374_v56 }
 0x225   :  { %v61_v30 = vadd.f32 0.00625, %v60_v24  ;;  %v191_v31 = vsel %vm163_vm7, %v190_v27, inf  ;;  %v186_v32 = vsel %vm163_vm7, %v185_v29, -inf }
 0x226   :  { %192 = vmin.xlane.f32.xlu1 %v191_v31  ;;  %187 = vmax.xlane.f32.xlu0 %v186_v32  ;;  %v376_v62 = vmax.f32 %v375_v28, 1e-12 }
 0x227   :  { %v641_v33 = vpop.eup %640  ;;  %v62_v35 = vsub.f32 0.0, %v61_v30 }
 0x228   :  { %v56_v34 = vmul.f32 0.6931472, %v641_v33  ;;  %v377_v3 = vmin.f32 %v376_v62, 1e+12 }
 0x229   :  { %v643_v36 = vpop.eup %642 }
 0x22a   :  { %v57_v37 = vsub.f32 %v49_v57, %v56_v34  ;;  %v490_v38 = vmul.f32 %v643_v36, %v488_v17  ;;  %v498_v57 = vsub.f32 1.0, %v570_v23  ;;  %v378_v5 = vsel %vm45_vm3, %v377_v3, 0.0 }
 0x22c   :  { %v63_v40 = vmul.f32 %v62_v35, %v57_v37  ;;  %v492_v41 = vsel %vm491_vm14, %v488_v17, %v490_v38  ;;  %v58_v42 = vmul.f32 1.442695, %v57_v37 }
 0x22d   :  { %v495_v43 = vsel %vm493_vm15, %v494_v39, %v492_v41 }
 0x22e   :  { %v64_v45 = vsel %vm45_vm3, %v63_v40, 0.0  ;;  %v499_v46 = vadd.f32 1.3, %v495_v43  ;;  %v517_v47 = vsub.f32 2.0, %v495_v43  ;;  %644 = vpow2.f32 %v58_v42 }
 0x22f   :  { %65 = vadd.xlane.f32.xlu0 %v64_v45  ;;  %vm514_vm0 = vcmp.lt.f32.partialorder %v495_v43, 2.0 }
 0x230   :  { %v582_v48 = vadd.f32 -2.0, %v499_v46  ;;  %v518_v49 = vmul.f32 1.442695, %v517_v47  ;;  %v515_v59 = vsel %vm514_vm0, 1.0, %v652_v1 }
 0x231   :  { %v516_v61 = vmul.f32 %v515_v59, %v498_v57 }
 0x232   :  { %v501_v51 = vmax.f32 %v582_v48, 0.0  ;;  %646 = vpow2.f32 %v518_v49 }
 0x234   :  { %v502_v52 = vmul.f32 %v501_v51, %v497_v50 }
 0x236   :  { %vm503_vm1 = vcmp.gt.f32.partialorder %v502_v52, 0.0  ;;  %v509_v53 = vsel %vm163_vm7, %v502_v52, 0.0 }
 0x237   :  { %v504_v54 = vsel %vm503_vm1, 1.0, %v652_v1 }
 0x238   :  { %v505_v58 = vsel %vm163_vm7, %v504_v54, 0.0  ;;  %v645_v60 = vpop.eup %644 }
 0x239   :  { %506 = vadd.xlane.f32.xlu0 %v505_v58  ;;  %v74_v4 = vsub.f32 1.0, %v645_v60 }
 0x23b   :  { %v75_v6 = vmul.f32 %v74_v4, %v74_v4 }
 0x23c   :  { %v647_v63 = vpop.eup %646 }
 0x23d   :  { %v520_v0 = vmul.f32 %v647_v63, %v516_v61  ;;  %v76_v56 = vmul.f32 %v75_v6, %v62_v35 }
 0x23f   :  { %v521_v2 = vsel %vm163_vm7, %v520_v0, 0.0  ;;  %v525_v55 = vmul.f32 %v520_v0, %v517_v47  ;;  %v77_v7 = vmul.f32 %v76_v56, %v57_v37 }
 0x240   :  { %522 = vadd.xlane.f32.xlu0 %v521_v2 }
 0x241   :  { %v526_v1 = vsel %vm163_vm7, %v525_v55, 0.0  ;;  %v78_v8 = vsel %vm45_vm3, %v77_v7, 0.0  ;;  %vm546_vm3 = vcmp.eq.s32.totalorder %v720_v26, 0  ;;  %vm560_vm7 = vcmp.eq.s32.totalorder %v720_v26, 5 }
 0x244   :  { %379 = vadd.xlane.f32.xlu0 %v378_v5 }
 0x248   :  { %510 = vadd.xlane.f32.xlu0 %v509_v53 }
 0x24c   :  { %527 = vadd.xlane.f32.xlu0 %v526_v1 }
 0x250   :  { %79 = vadd.xlane.f32.xlu0 %v78_v8 }
 0x2b3   :  { %v188_v9 = vpop.xlane.xlu0 %187  ;;  %v193_v10 = vpop.xlane.xlu1 %192 }
 0x2b4   :  { %v194_v11 = vsub.f32 %v188_v9, %v193_v10 }
 0x2b6   :  { %v195_v13 = vadd.f32 0.3, %v194_v11 }
 0x2b8   :  { %v196_v16 = vmax.f32 %v195_v13, 0.0 }
 0x2ba   :  { %v197_v20 = vrot.slane %v196_v16, 4 }
 0x2bc   :  { %v66_v12 = vpop.xlane.xlu0 %65  ;;  %v198_v24 = vadd.f32 %v197_v20, %v196_v16 }
 0x2bd   :  { %v67_v18 = vrot.slane %v66_v12, 4 }
 0x2be   :  { %v199_v31 = vrot.slane %v198_v24, 2 }
 0x2bf   :  { %v68_v22 = vadd.f32 %v67_v18, %v66_v12 }
 0x2c0   :  { %v200_v39 = vadd.f32 %v199_v31, %v198_v24 }
 0x2c1   :  { %v69_v29 = vrot.slane %v68_v22, 2 }
 0x2c2   :  { %v201_v46 = vrot.slane %v200_v39, 1 }
 0x2c3   :  { %v70_v36 = vadd.f32 %v69_v29, %v68_v22 }
 0x2c4   :  { %v202_v54 = vadd.f32 %v201_v46, %v200_v39 }
 0x2c5   :  { %v71_v43 = vrot.slane %v70_v36, 1 }
 0x2c6   :  { %v507_v14 = vpop.xlane.xlu0 %506  ;;  %v203_v62 = vmul.f32 0.125, %v202_v54 }
 0x2c7   :  { %v508_v15 = vadd.f32 1e-05, %v507_v14  ;;  %v72_v50 = vadd.f32 %v71_v43, %v70_v36 }
 0x2c8   :  { %v552_v10 = vsel %vm551_vm4, %v203_v62, 0.0 }
 0x2c9   :  { %648 = vrcp.f32 %v508_v15  ;;  %v73_v59 = vmul.f32 0.125, %v72_v50 }
 0x2cb   :  { %v542_v3 = vadd.f32 %v203_v62, %v73_v59  ;;  %v549_v7 = vsel %vm548_vm2, %v73_v59, 0.0 }
 0x2cd   :  { %v523_v17 = vpop.xlane.xlu0 %522 }
 0x2ce   :  { %v524_v19 = vadd.f32 1e-05, %v523_v17 }
 0x2d0   :  { %650 = vrcp.f32 %v524_v19 }
 0x2d1   :  { %v380_v21 = vpop.xlane.xlu0 %379 }
 0x2d2   :  { %v381_v23 = vrot.slane %v380_v21, 4 }
 0x2d3   :  { %v649_v33 = vpop.eup %648 }
 0x2d4   :  { %v382_v25 = vadd.f32 %v381_v23, %v380_v21 }
 0x2d5   :  { %v511_v27 = vpop.xlane.xlu0 %510 }
 0x2d6   :  { %v383_v30 = vrot.slane %v382_v25, 2  ;;  %v513_v37 = vmul.f32 %v649_v33, %v511_v27 }
 0x2d8   :  { %v384_v32 = vadd.f32 %v383_v30, %v382_v25 }
 0x2d9   :  { %v528_v34 = vpop.xlane.xlu0 %527 }
 0x2da   :  { %v651_v35 = vpop.eup %650  ;;  %v385_v40 = vrot.slane %v384_v32, 1 }
 0x2db   :  { %v530_v38 = vmul.f32 %v651_v35, %v528_v34 }
 0x2dc   :  { %v386_v47 = vadd.f32 %v385_v40, %v384_v32 }
 0x2dd   :  { %v531_v41 = vadd.f32 %v530_v38, %v513_v37  ;;  %v80_v42 = vpop.xlane.xlu0 %79 }
 0x2de   :  { %v81_v44 = vrot.slane %v80_v42, 4  ;;  %v387_v57 = vmul.f32 0.125, %v386_v47 }
 0x2df   :  { %v532_v45 = vrot.slane %v531_v41, 4 }
 0x2e0   :  { %v82_v48 = vadd.f32 %v81_v44, %v80_v42  ;;  %v539_v63 = vmul.f32 0.0005, %v387_v57 }
 0x2e1   :  { %v533_v49 = vadd.f32 %v532_v45, %v531_v41 }
 0x2e2   :  { %v83_v51 = vrot.slane %v82_v48, 2  ;;  %v543_v6 = vadd.f32 %v542_v3, %v539_v63  ;;  %v555_v12 = vsel %vm554_vm5, %v539_v63, 0.0 }
 0x2e3   :  { %v534_v52 = vrot.slane %v533_v49, 2 }
 0x2e4   :  { %v84_v28 = vadd.f32 %v83_v51, %v82_v48 }
 0x2e5   :  { %v535_v58 = vadd.f32 %v534_v52, %v533_v49 }
 0x2e6   :  { %v85_v60 = vrot.slane %v84_v28, 1 }
 0x2e7   :  { %v536_v61 = vrot.slane %v535_v58, 1 }
 0x2e8   :  { %v86_v0 = vadd.f32 %v85_v60, %v84_v28 }
 0x2e9   :  { %v537_v2 = vadd.f32 %v536_v61, %v535_v58 }
 0x2ea   :  { %v87_v4 = vmul.f32 0.125, %v86_v0 }
 0x2eb   :  { %v538_v5 = vmul.f32 0.125, %v537_v2 }
 0x2ec   :  { %v540_v53 = vmul.f32 0.25, %v87_v4 }
 0x2ed   :  { %v541_v55 = vmul.f32 0.4, %v538_v5 }
 0x2ee   :  { %v544_v56 = vadd.f32 %v543_v6, %v540_v53  ;;  %v558_v14 = vsel %vm557_vm6, %v540_v53, 0.0 }
 0x2ef   :  { %v561_v16 = vsel %vm560_vm7, %v541_v55, 0.0 }
 0x2f0   :  { %v545_v1 = vadd.f32 %v544_v56, %v541_v55 }
 0x2f2   :  { %v547_v8 = vsel %vm546_vm3, %v545_v1, 0.0 }
 0x2f3   :  { %v550_v9 = vadd.f32 %v549_v7, %v547_v8 }
 0x2f5   :  { %v553_v11 = vadd.f32 %v552_v10, %v550_v9 }
 0x2f7   :  { %v556_v13 = vadd.f32 %v555_v12, %v553_v11 }
 0x2f9   :  { %v559_v15 = vadd.f32 %v558_v14, %v556_v13 }
 0x2fb   :  { %v562_v17 = vadd.f32 %v561_v16, %v559_v15 }
 0x2fd   :  { %563 = vst [vmem:[%s775_s4] sm:$0x1] %v562_v17 }

</bundles_post_ra>
